<compile_context>
chip_gen: v7x
topology: tpu7x:2x2x1
jax: 0.10.0
libtpu: 0.0.40
codegen_flags: <defaults>
</compile_context>

<pallas_src>
import functools

import jax
import jax.numpy as jnp
from jax.experimental import pallas as pl
from jax.experimental.pallas import tpu as pltpu


def _int_pow(x, n: int):
    """x**n for static integer n >= 1 via exponentiation by squaring (VPU only)."""
    result = None
    base = x
    while n > 0:
        if n & 1:
            result = base if result is None else result * base
        n >>= 1
        if n:
            base = base * base
    return result


def _gem_kernel_static(x_ref, o_ref, *, p_int, eps):
    # x_ref : VMEM tile (TM, H*W);  o_ref : VMEM tile (TM, 1)
    x = x_ref[...].astype(jnp.float32)            # bf16-friendly: cast in VMEM
    xc = jnp.maximum(x, eps)                      # clamp(min=eps)
    xp = _int_pow(xc, p_int)                      # VPU multiplies, no EUP work
    m = jnp.mean(xp, axis=-1, keepdims=True)      # avg pool over full spatial extent
    # Only TM transcendentals per tile (final 1/p root) -- negligible.
    o_ref[...] = jnp.power(m, 1.0 / p_int).astype(o_ref.dtype)


def _gem_kernel_dynamic(p_ref, x_ref, o_ref, *, eps):
    # p_ref : SMEM scalar parameter, shape (1,);  x/o tiles as above.
    p = p_ref[0]
    inv_p = 1.0 / p                               # hoisted once per tile
    x = x_ref[...].astype(jnp.float32)
    xc = jnp.maximum(x, eps)
    xp = jnp.power(xc, p)                         # dynamic p -> exp/log on the EUP
    m = jnp.mean(xp, axis=-1, keepdims=True)
    o_ref[...] = jnp.power(m, inv_p).astype(o_ref.dtype)


def _vmem_budget():
    """(target_block_bytes, vmem_limit_bytes), chosen per TPU generation."""
    try:
        cap = int(pltpu.get_tpu_info().vmem_capacity_bytes)
    except Exception:
        cap = 64 * 1024 * 1024                    # assume the small (v7x) end
    # ~4 MiB f32 blocks on 128-MiB-VMEM chips (v5e/v6e), ~2 MiB on v7x (64 MiB):
    # 2x double-buffered input + f32 temps stay well inside the scoped limit.
    target_block = 4 * 1024 * 1024 if cap >= 96 * 1024 * 1024 else 2 * 1024 * 1024
    vmem_limit = min(32 * 1024 * 1024, cap // 2)
    return target_block, vmem_limit


def _pick_row_tile(rows, hw, target_block_bytes, min_grid_steps=8):
    """Row tile TM (multiple of 8): block sized by the f32 working set, capped so
    the grid keeps >= min_grid_steps steps (pipelining + v7x megacore split)."""
    bytes_per_row_f32 = max(1, hw) * 4            # kernel upcasts the block to f32
    tm_bytes = (target_block_bytes // bytes_per_row_f32) // 8 * 8
    rows8 = ((rows + 7) // 8) * 8                 # never exceed the padded row count
    tm_steps = (rows8 // min_grid_steps) // 8 * 8
    tm = min(max(8, tm_bytes), max(8, tm_steps), rows8)
    return max(8, tm)


def _concrete_scalar(p):
    """float(p) if p is a trace-time constant, else None (traced under jit)."""
    try:
        return float(jnp.asarray(p).reshape(-1)[0])
    except (jax.errors.ConcretizationTypeError, TypeError):
        return None


def gem_pallas(x, p, eps=1e-6):
    """GeM forward. x: (N, C, H, W) f32/bf16 array; p: (1,) float parameter."""
    N, C, H, W = x.shape
    rows, hw = N * C, H * W
    xr = x.reshape(rows, hw)

    target_block, vmem_limit = _vmem_budget()
    tm = _pick_row_tile(rows, hw, target_block)

    # Pad rows so the grid covers the array exactly (no OOB, no masking);
    # padded rows are sliced off after the call.
    rows_pad = pl.cdiv(rows, tm) * tm
    if rows_pad != rows:
        xr = jnp.pad(xr, ((0, rows_pad - rows), (0, 0)))
    grid = (rows_pad // tm,)

    itemsize = jnp.dtype(x.dtype).itemsize
    p_val = _concrete_scalar(p)
    use_static = (p_val is not None) and (p_val == round(p_val)) and (1 <= round(p_val) <= 16)

    x_spec = pl.BlockSpec((tm, hw), lambda i: (i, 0))
    o_spec = pl.BlockSpec((tm, 1), lambda i: (i, 0))
    compiler_params = pltpu.CompilerParams(
        dimension_semantics=("parallel",),        # independent row blocks
        vmem_limit_bytes=vmem_limit,
    )
    bytes_accessed = rows_pad * hw * itemsize + rows_pad * itemsize

    if use_static:
        p_int = int(round(p_val))
        cost = pl.CostEstimate(
            flops=(3 + max(p_int - 1, 1)) * rows_pad * hw,
            transcendentals=2 * rows_pad,
            bytes_accessed=bytes_accessed,
        )
        out = pl.pallas_call(
            functools.partial(_gem_kernel_static, p_int=p_int, eps=eps),
            out_shape=jax.ShapeDtypeStruct((rows_pad, 1), x.dtype),
            grid=grid,
            in_specs=[x_spec],
            out_specs=o_spec,
            compiler_params=compiler_params,
            cost_estimate=cost,
        )(xr)
    else:
        cost = pl.CostEstimate(
            flops=3 * rows_pad * hw,
            transcendentals=2 * rows_pad * hw + 2 * rows_pad,
            bytes_accessed=bytes_accessed,
        )
        p_arr = jnp.asarray(p, jnp.float32).reshape(1)
        out = pl.pallas_call(
            functools.partial(_gem_kernel_dynamic, eps=eps),
            out_shape=jax.ShapeDtypeStruct((rows_pad, 1), x.dtype),
            grid=grid,
            in_specs=[
                pl.BlockSpec(memory_space=pltpu.MemorySpace.SMEM),  # p scalar
                x_spec,
            ],
            out_specs=o_spec,
            compiler_params=compiler_params,
            cost_estimate=cost,
        )(p_arr, xr)

    return out[:rows].reshape(N, C, 1, 1)


def gem_reference(x, p, eps=1e-6):
    pv = jnp.asarray(p, jnp.float32).reshape(-1)[0]
    xc = jnp.maximum(x.astype(jnp.float32), eps)
    xp = jnp.power(xc, pv)
    m = jnp.mean(xp, axis=(2, 3), keepdims=True)
    return jnp.power(m, 1.0 / pv).astype(x.dtype)


if __name__ == "__main__":
    key = jax.random.PRNGKey(0)
    N, C, H, W = 2, 4, 16, 16
    x = jax.random.normal(key, (N, C, H, W), dtype=jnp.float32)
    eps = 1e-6

    # Static-p fast path (GeM.__init__ default: p = ones(1) * 3).
    p3 = jnp.ones((1,), dtype=jnp.float32) * 3.0
    out = jax.block_until_ready(gem_pallas(x, p3, eps))
    ref = gem_reference(x, p3, eps)
    assert out.shape == (N, C, 1, 1)
    assert jnp.allclose(out, ref, rtol=1e-4, atol=1e-5)

    # Dynamic-p (SMEM scalar) path: non-integer / learnable p.
    p_dyn = jnp.asarray([2.5], dtype=jnp.float32)
    out_d = jax.block_until_ready(gem_pallas(x, p_dyn, eps))
    ref_d = gem_reference(x, p_dyn, eps)
    assert jnp.allclose(out_d, ref_d, rtol=1e-4, atol=1e-5)

    print("KERNEL_OK")
</pallas_src>

<mosaic_0001>
module attributes {stable_mosaic.version = 11 : i64} {
  func.func @_gem_kernel_static(%arg0: i32, %arg1: memref<8x256xf32, #tpu.memory_space<vmem>>, %arg2: memref<8x1xf32, #tpu.memory_space<vmem>>) attributes {dimension_semantics = [#tpu.dimension_semantics<parallel>], iteration_bounds = array<i64: 1>, scalar_prefetch = 0 : i64, scratch_operands = 0 : i64, tpu.core_type = #tpu.core_type<tc>, window_params = [{transform_indices = @transform_0, window_bounds = array<i64: 8, 256>}, {transform_indices = @transform_1, window_bounds = array<i64: 8, 1>}]} {
    %c0 = arith.constant 0 : index
    %c0_0 = arith.constant 0 : index
    %0 = vector.load %arg1[%c0, %c0_0] : memref<8x256xf32, #tpu.memory_space<vmem>>, vector<8x256xf32>
    %cst = arith.constant 9.99999997E-7 : f32
    %1 = vector.broadcast %cst : f32 to vector<8x256xf32>
    %2 = arith.maximumf %0, %1 : vector<8x256xf32>
    %3 = arith.mulf %2, %2 : vector<8x256xf32>
    %4 = arith.mulf %2, %3 : vector<8x256xf32>
    %cst_1 = arith.constant dense<0.000000e+00> : vector<8xf32>
    %5 = vector.multi_reduction <add>, %4, %cst_1 [1] : vector<8x256xf32> to vector<8xf32>
    %6 = vector.shape_cast %5 : vector<8xf32> to vector<8x1xf32>
    %cst_2 = arith.constant 2.560000e+02 : f32
    %7 = vector.broadcast %cst_2 : f32 to vector<8x1xf32>
    %8 = arith.divf %6, %7 : vector<8x1xf32>
    %cst_3 = arith.constant 0.333333343 : f32
    %9 = vector.broadcast %cst_3 : f32 to vector<8x1xf32>
    %10 = math.powf %8, %9 : vector<8x1xf32>
    %c0_4 = arith.constant 0 : index
    %c0_5 = arith.constant 0 : index
    %11 = vector.load %arg2[%c0_4, %c0_5] : memref<8x1xf32, #tpu.memory_space<vmem>>, vector<8x1xf32>
    tpu.vector_store %arg2[%c0_4, %c0_5], %10 {strides = array<i32>} : memref<8x1xf32, #tpu.memory_space<vmem>>, vector<8x1xf32>,
    return
  }
  func.func @transform_0(%arg0: i32) -> (i32, i32) {
    %c0_i32 = arith.constant 0 : i32
    %c0_i32_0 = arith.constant 0 : i32
    return %arg0, %c0_i32 : i32, i32
  }
  func.func @transform_1(%arg0: i32) -> (i32, i32) {
    %c0_i32 = arith.constant 0 : i32
    %c0_i32_0 = arith.constant 0 : i32
    return %arg0, %c0_i32 : i32, i32
  }
}

</mosaic_0001>

<bundles_post_ra>
// kernel: tpu_custom_call.1
= control target key start
LH: loop header
LB: loop body
LE: loop exit
PB: predicated region body
PF: predicated region fallthrough
CT: control target
= control target key end

     0   :  { %6 = vsyncpa [#allocation3], 0  ;;  %s88_s6 = smov [#allocation2]   ;;  %s114_s0 = inlined_call_operand.hbm [shape: f32[8,256], index: 0, kind: input, shape index: {}]   ;;  %s115_s1 = inlined_call_operand.vmem [shape: f32[8,1], index: 1, kind: output, shape index: {}]  }
   0x1   :  { %s13_s7 = sshll.u32 %s88_s6, 4  ;;  %s64_s10 = scalar_lea.hbm %s114_s0, 256  ;;  %s14_s7 = int_to_ptr.vmem [resolvable:$true] %s13_s7 }
   0x2   :  { %p65_p0 = scmp.ne.s32.totalorder %s114_s0, %s64_s10  ;;  %p68_p1 = scmp.lt.u32.totalorder %s64_s10, %s114_s0 }
   0x4   :  { %p70_p2 = pnand %p68_p1, %p65_p0 }
   0x6   :  { %73 = shalt.err (!%p70_p2)
}
   0x7   :  { %s74_s15 = scalar_lea.vmem %s14_s7, 256  ;;  %p79_p4 = scmp.lt.s32.totalorder %s14_s7, %s14_s7 }
   0x8   :  { %p75_p3 = scmp.ne.s32.totalorder %s14_s7, %s74_s15  ;;  %p80_p5 = scmp.lt.s32.totalorder %s74_s15, %s74_s15 }
   0xa   :  { %p81_p6 = por %p80_p5, %p79_p4 }
   0xc   :  { %p82_p7 = pnand %p81_p6, %p75_p3 }
   0xe   :  { %85 = shalt.err (!%p82_p7)
}
   0xf   :  { %16 = dma.hbm_to_vmem [thread:$0]  %s114_s0, 256, %s14_s7, [#allocation3]  }
  0x10   :  { %86 = dma.done.wait [#allocation3], 256  }
  0x11   :  { %87 = vsyncadd [#allocation3], 4294967040  ;;  %v20_v0 = vld [vmem:[#allocation2] sm:$0xff]  ;;  %v21_v1 = vld [vmem:[#allocation2 + $0x8] sm:$0xff]  ;;  %vm34_vm4 = vcmask 7168  }
  0x12   :  { %v22_v2 = vmax.f32 %v20_v0, 1e-06  ;;  %v23_v3 = vmax.f32 %v21_v1, 1e-06 }
  0x14   :  { %v24_v4 = vmul.f32 %v22_v2, %v22_v2  ;;  %v25_v5 = vmul.f32 %v23_v3, %v23_v3 }
  0x16   :  { %v26_v6 = vmul.f32 %v24_v4, %v22_v2  ;;  %v27_v7 = vmul.f32 %v25_v5, %v23_v3 }
  0x18   :  { %v28_v8 = vadd.f32 %v27_v7, %v26_v6 }
  0x1a   :  { %29 = vadd.xlane.f32.xlu0 %v28_v8 }
  0xa7   :  { %v30_v9 = vpop.xlane.xlu0 %29 }
  0xa8   :  { %v32_v10 = vmul.f32 0.00390625, %v30_v9 }
  0xaa   :  { %v43_v11 = vand.u32 2147483647, %v32_v10  ;;  %v47_v14 = vand.u32 2147483648, %v32_v10  ;;  %vm42_vm2 = vcmp.lt.f32.partialorder %v32_v10, 0.0  ;;  %vm41_vm3 = vcmp.eq.f32.partialorder %v32_v10, 0.0 }
  0xac   :  { %60 = vlog2.f32 %v43_v11  ;;  %vm51_vm0 = vweird.f32 %v43_v11  ;;  %vm53_vm1 = vcmp.eq.f32.partialorder %v43_v11, 0.0  ;;  %vm44_vm5 = vcmp.eq.f32.partialorder %v43_v11, inf }
  0xb6   :  { %v61_v12 = vpop.eup %60 }
  0xb7   :  { %v48_v13 = vmul.f32 0.33333334, %v61_v12 }
  0xb9   :  { %62 = vpow2.f32 %v48_v13 }
  0xc3   :  { %v63_v15 = vpop.eup %62 }
  0xc4   :  { %v50_v16 = vor.u32 %v63_v15, %v47_v14 }
  0xc6   :  { %v52_v17 = vsel %vm51_vm0, %v32_v10, %v50_v16 }
  0xc7   :  { %v55_v18 = vsel %vm53_vm1, %v47_v14, %v52_v17 }
  0xc8   :  { %v56_v19 = vsel %vm42_vm2, nan, %v55_v18 }
  0xc9   :  { %v57_v20 = vsel %vm41_vm3, 0.0, %v56_v19 }
  0xca   :  { %v58_v21 = vsel %vm44_vm5, inf, %v57_v20 }
  0xcb   :  { %35 = vst.msk [vmem:[%s115_s1] sm:$0xff] %vm34_vm4, %v58_v21 }
  0xcc   :  { %40 = vsyncpa [#allocation3], 1 }

</bundles_post_ra>
